<compile_context>
chip_gen: v7x
topology: tpu7x:2x2x1
jax: 0.10.0
libtpu: 0.0.40
codegen_flags: <defaults>
</compile_context>

<pallas_src>
import functools
import math

import jax
import jax.numpy as jnp
import numpy as np
from jax import lax
from jax.experimental import pallas as pl
from jax.experimental.pallas import tpu as pltpu

_LOG_2PI = math.log(2.0 * math.pi)


def _llnormal_kernel(mu_ref, logvar_ref, y_ref, out_ref, acc_ref, *,
                     rows_total, tile_r, n_r_steps, first_masked, mask_rows):
    """Accumulate sum((y-mu)^2*exp(-logvar) + logvar) over one (tile_r, C) block.

    Grid = (chunk, row_tile); the row-tile axis is the reduction ("arbitrary"),
    the chunk axis is "parallel" (megacore).  A small (8, C) VMEM accumulator
    carries per-sublane partial sums; the single cross-lane/sublane reduce
    happens in the finalize branch, writing one scalar per chunk.
    """
    c = pl.program_id(0)
    bi = pl.program_id(1)

    @pl.when(bi == 0)
    def _():
        acc_ref[...] = jnp.zeros_like(acc_ref)

    mu = mu_ref[...].astype(jnp.float32)
    logvar = logvar_ref[...].astype(jnp.float32)
    y = y_ref[...].astype(jnp.float32)
    diff = y - mu
    # Constants (-0.5 scale, log(2*pi) offset, 1/B) are hoisted to the epilogue.
    term = diff * diff * jnp.exp(-logvar) + logvar

    acc_rows, cols = acc_ref.shape

    def accumulate(vals):
        if tile_r == acc_rows:
            acc_ref[...] += vals
        else:
            # Pure-VPU fold: group rows in slabs of 8 sublanes and add vreg-wise.
            acc_ref[...] += vals.reshape(tile_r // acc_rows, acc_rows,
                                         cols).sum(axis=0)

    if mask_rows:
        t = c * n_r_steps + bi
        is_tail = t >= first_masked

        @pl.when(jnp.logical_not(is_tail))
        def _():
            accumulate(term)

        @pl.when(is_tail)
        def _():
            # Partial / phantom tile: zero rows past the end of the array.
            # (jnp.where, not multiply-by-mask: padded rows may be Inf/NaN.)
            rows = t * tile_r + lax.broadcasted_iota(jnp.int32, term.shape, 0)
            accumulate(jnp.where(rows < rows_total, term, 0.0))
    else:
        accumulate(term)

    @pl.when(bi == pl.num_programs(1) - 1)
    def _():
        out_ref[0, 0] = jnp.sum(acc_ref[...])


def _choose_layout(batch, dim, max_cols):
    """Pick an exact (rows, cols) factorization of batch*dim with cols % 128 == 0."""
    n = batch * dim
    cap = 2048 if max_cols is None else max_cols
    cap = max(128, (cap // 128) * 128)
    best = None
    for cols in range(cap, 127, -128):
        if n % cols == 0:
            rows = n // cols
            if best is None:
                best = (rows, cols)          # largest lane-aligned divisor
            if rows >= 8:
                return rows, cols            # prefer sublane-friendly rows
    if best is not None:
        return best
    # No lane-aligned exact factorization: keep the natural (B, D) layout
    # (correct; lane-sparse only when D < 128).
    # TODO(synk): for huge non-factorizable D, add a lane-masked tail tile
    # instead of a full-row block.
    return batch, dim


def llnormal_pallas(mu, logvar, y, *, tile_rows=None, max_cols=None):
    """Negative Gaussian log-likelihood; matches the PyTorch LLNormal module.

    The kernel is HBM-bandwidth-bound: prefer bf16 inputs at the call site
    (upcast to f32 happens in-kernel), which nearly halves wall-clock on
    v5e/v6e and still helps on v7x.
    """
    assert mu.shape == logvar.shape == y.shape and mu.ndim == 2
    B, D = mu.shape

    R, C = _choose_layout(B, D, max_cols)
    if (R, C) != (B, D):
        mu = mu.reshape(R, C)
        logvar = logvar.reshape(R, C)
        y = y.reshape(R, C)

    # ---- row tile: ~4 MiB of f32-equivalent working set per input block ----
    if R < 8:
        tile_r = R
    else:
        max_tile_r = (R // 8) * 8
        if tile_rows is not None:
            assert tile_rows % 8 == 0, "tile_rows must be a multiple of 8"
            tile_r = min(tile_rows, max_tile_r)
        else:
            block_elems = (4 << 20) // 4
            tile_r = max(8, min(max_tile_r, (block_elems // C // 8) * 8))

    n_r_tiles = -(-R // tile_r)  # ceil
    # Always split across 2 chunks when possible so v7x's second TensorCore
    # gets half the work even for odd tile counts (phantom tiles are masked).
    n_chunks = 2 if n_r_tiles >= 2 else 1
    n_r_steps = -(-n_r_tiles // n_chunks)
    total_tiles = n_chunks * n_r_steps
    first_masked = (R // tile_r) if (R % tile_r) else n_r_tiles
    mask_rows = total_tiles > first_masked

    kernel = functools.partial(
        _llnormal_kernel, rows_total=R, tile_r=tile_r, n_r_steps=n_r_steps,
        first_masked=first_masked, mask_rows=mask_rows)

    if total_tiles > n_r_tiles:
        # Phantom tiles past the end clamp to the last real block; their
        # contribution is zeroed by the row mask inside the kernel.
        def row_block(c, bi):
            return (jnp.minimum(c * n_r_steps + bi, n_r_tiles - 1), 0)
    else:
        def row_block(c, bi):
            return (c * n_r_steps + bi, 0)

    in_blk = pl.BlockSpec((tile_r, C), row_block)
    acc_rows = 8 if tile_r % 8 == 0 else tile_r

    partials = pl.pallas_call(
        kernel,
        out_shape=jax.ShapeDtypeStruct((n_chunks, 1), jnp.float32),
        grid_spec=pltpu.PrefetchScalarGridSpec(
            num_scalar_prefetch=0,
            grid=(n_chunks, n_r_steps),
            in_specs=[in_blk, in_blk, in_blk],
            out_specs=pl.BlockSpec((1, 1), lambda c, bi: (c, 0),
                                   memory_space=pltpu.SMEM),
            scratch_shapes=[pltpu.VMEM((acc_rows, C), jnp.float32)],
        ),
        compiler_params=pltpu.CompilerParams(
            dimension_semantics=("parallel", "arbitrary"),
            vmem_limit_bytes=48 * 1024 * 1024,
        ),
    )(mu, logvar, y)

    # loss = -mean_b(sum_d log_prob) = 0.5 * (sum(term)/B + D*log(2*pi))
    total = jnp.sum(partials)
    return 0.5 * (total / jnp.float32(B) + jnp.float32(D * _LOG_2PI))


def llnormal_ref(mu, logvar, y):
    """Pure-JAX reference mirroring the PyTorch module."""
    mu = mu.astype(jnp.float32)
    logvar = logvar.astype(jnp.float32)
    y = y.astype(jnp.float32)
    std = jnp.exp(0.5 * logvar)
    var = std * std
    log_prob = (-0.5 * ((y - mu) ** 2) / var - jnp.log(std)
                - 0.5 * math.log(2.0 * math.pi))
    return -jnp.mean(jnp.sum(log_prob, axis=1))


def _check(name, B, D, dtype=jnp.float32, rtol=1e-5, atol=1e-5, **kw):
    key = jax.random.PRNGKey(0)
    k1, k2, k3 = jax.random.split(key, 3)
    mu = jax.random.normal(k1, (B, D), dtype=jnp.float32).astype(dtype)
    logvar = (0.5 * jax.random.normal(k2, (B, D), dtype=jnp.float32)).astype(dtype)
    y = jax.random.normal(k3, (B, D), dtype=jnp.float32).astype(dtype)
    out = jax.block_until_ready(llnormal_pallas(mu, logvar, y, **kw))
    ref = jax.block_until_ready(llnormal_ref(mu, logvar, y))
    np.testing.assert_allclose(np.asarray(out), np.asarray(ref),
                               rtol=rtol, atol=atol, err_msg=name)


if __name__ == "__main__":
    # Small, module-consistent shape: [batch, feature] = [16, 128].
    _check("base", 16, 128)
    # Multi-tile reduction with an even 2-chunk split (megacore path on v7x).
    _check("even_chunks", 64, 128, tile_rows=16, max_cols=128)
    # Odd tile count: 2 chunks + phantom tile + partial tail tile (gated mask).
    _check("odd_chunks", 72, 128, tile_rows=16, max_cols=128)
    # D % 128 != 0 and B*D not lane-factorizable -> natural (B, D) fallback.
    _check("fallback_layout", 50, 100, tile_rows=16)
    # Tiny input: single sub-8-row tile.
    _check("tiny", 2, 64)
    # bf16 inputs (half the HBM traffic); kernel upcasts to f32 internally.
    _check("bf16", 16, 128, dtype=jnp.bfloat16, rtol=1e-4, atol=1e-4)
    print("KERNEL_OK")
</pallas_src>

<mosaic_0001>
module attributes {stable_mosaic.version = 11 : i64} {
  func.func @_llnormal_kernel(%arg0: i32, %arg1: i32, %arg2: memref<8x256xf32, #tpu.memory_space<vmem>>, %arg3: memref<8x256xf32, #tpu.memory_space<vmem>>, %arg4: memref<8x256xf32, #tpu.memory_space<vmem>>, %arg5: memref<1x1xf32, #tpu.memory_space<smem>>, %arg6: memref<8x256xf32, #tpu.memory_space<vmem>>) attributes {dimension_semantics = [#tpu.dimension_semantics<parallel>, #tpu.dimension_semantics<arbitrary>], iteration_bounds = array<i64: 1, 1>, scalar_prefetch = 0 : i64, scratch_operands = 1 : i64, tpu.core_type = #tpu.core_type<tc>, window_params = [{transform_indices = @transform_0, window_bounds = array<i64: 8, 256>}, {transform_indices = @transform_1, window_bounds = array<i64: 8, 256>}, {transform_indices = @transform_2, window_bounds = array<i64: 8, 256>}, {transform_indices = @transform_3, window_bounds = array<i64: 1, 1>}]} {
    %c0_i32 = arith.constant 0 : i32
    %0 = arith.cmpi eq, %arg1, %c0_i32 : i32
    %1 = arith.extui %0 : i1 to i32
    %c0_i32_0 = arith.constant 0 : i32
    %2 = arith.cmpi ne, %1, %c0_i32_0 : i32
    scf.if %2 {
      %cst_12 = arith.constant 0.000000e+00 : f32
      %19 = vector.broadcast %cst_12 : f32 to vector<8x256xf32>
      %c0_13 = arith.constant 0 : index
      %c0_14 = arith.constant 0 : index
      %20 = vector.load %arg6[%c0_13, %c0_14] : memref<8x256xf32, #tpu.memory_space<vmem>>, vector<8x256xf32>
      tpu.vector_store %arg6[%c0_13, %c0_14], %19 {strides = array<i32>} : memref<8x256xf32, #tpu.memory_space<vmem>>, vector<8x256xf32>,
    } else {
    }
    %c0 = arith.constant 0 : index
    %c0_1 = arith.constant 0 : index
    %3 = vector.load %arg2[%c0, %c0_1] : memref<8x256xf32, #tpu.memory_space<vmem>>, vector<8x256xf32>
    %c0_2 = arith.constant 0 : index
    %c0_3 = arith.constant 0 : index
    %4 = vector.load %arg3[%c0_2, %c0_3] : memref<8x256xf32, #tpu.memory_space<vmem>>, vector<8x256xf32>
    %c0_4 = arith.constant 0 : index
    %c0_5 = arith.constant 0 : index
    %5 = vector.load %arg4[%c0_4, %c0_5] : memref<8x256xf32, #tpu.memory_space<vmem>>, vector<8x256xf32>
    %6 = arith.subf %5, %3 : vector<8x256xf32>
    %7 = arith.mulf %6, %6 : vector<8x256xf32>
    %cst = arith.constant 0.000000e+00 : f32
    %8 = vector.broadcast %cst : f32 to vector<8x256xf32>
    %9 = arith.subf %8, %4 : vector<8x256xf32>
    %10 = math.exp %9 : vector<8x256xf32>
    %11 = arith.mulf %7, %10 : vector<8x256xf32>
    %12 = arith.addf %11, %4 : vector<8x256xf32>
    %c0_6 = arith.constant 0 : index
    %c0_7 = arith.constant 0 : index
    %13 = vector.load %arg6[%c0_6, %c0_7] : memref<8x256xf32, #tpu.memory_space<vmem>>, vector<8x256xf32>
    %14 = arith.addf %13, %12 : vector<8x256xf32>
    %c0_8 = arith.constant 0 : index
    %c0_9 = arith.constant 0 : index
    %15 = vector.load %arg6[%c0_8, %c0_9] : memref<8x256xf32, #tpu.memory_space<vmem>>, vector<8x256xf32>
    tpu.vector_store %arg6[%c0_8, %c0_9], %14 {strides = array<i32>} : memref<8x256xf32, #tpu.memory_space<vmem>>, vector<8x256xf32>,
    %c0_i32_10 = arith.constant 0 : i32
    %16 = arith.cmpi eq, %arg1, %c0_i32_10 : i32
    %17 = arith.extui %16 : i1 to i32
    %c0_i32_11 = arith.constant 0 : i32
    %18 = arith.cmpi ne, %17, %c0_i32_11 : i32
    scf.if %18 {
      %c0_12 = arith.constant 0 : index
      %c0_13 = arith.constant 0 : index
      %19 = vector.load %arg6[%c0_12, %c0_13] : memref<8x256xf32, #tpu.memory_space<vmem>>, vector<8x256xf32>
      %20 = vector.shape_cast %19 : vector<8x256xf32> to vector<1x8x256xf32>
      %cst_14 = arith.constant dense<0.000000e+00> : vector<1xf32>
      %21 = vector.multi_reduction <add>, %20, %cst_14 [1, 2] : vector<1x8x256xf32> to vector<1xf32>
      %22 = vector.shape_cast %21 : vector<1xf32> to vector<1x1x1xf32>
      %23 = vector.extract %22[0, 0, 0] : f32 from vector<1x1x1xf32>
      %c0_15 = arith.constant 0 : index
      %c0_16 = arith.constant 0 : index
      %24 = memref.load %arg5[%c0_15, %c0_16] : memref<1x1xf32, #tpu.memory_space<smem>>
      memref.store %23, %arg5[%c0_15, %c0_16] : memref<1x1xf32, #tpu.memory_space<smem>>
    } else {
    }
    return
  }
  func.func @transform_0(%arg0: i32, %arg1: i32) -> (i32, i32) {
    %c1_i32 = arith.constant 1 : i32
    %0 = arith.muli %arg0, %c1_i32 : i32
    %1 = arith.addi %0, %arg1 : i32
    %c0_i32 = arith.constant 0 : i32
    %c0_i32_0 = arith.constant 0 : i32
    return %1, %c0_i32 : i32, i32
  }
  func.func @transform_1(%arg0: i32, %arg1: i32) -> (i32, i32) {
    %c1_i32 = arith.constant 1 : i32
    %0 = arith.muli %arg0, %c1_i32 : i32
    %1 = arith.addi %0, %arg1 : i32
    %c0_i32 = arith.constant 0 : i32
    %c0_i32_0 = arith.constant 0 : i32
    return %1, %c0_i32 : i32, i32
  }
  func.func @transform_2(%arg0: i32, %arg1: i32) -> (i32, i32) {
    %c1_i32 = arith.constant 1 : i32
    %0 = arith.muli %arg0, %c1_i32 : i32
    %1 = arith.addi %0, %arg1 : i32
    %c0_i32 = arith.constant 0 : i32
    %c0_i32_0 = arith.constant 0 : i32
    return %1, %c0_i32 : i32, i32
  }
  func.func @transform_3(%arg0: i32, %arg1: i32) -> (i32, i32) {
    %c0_i32 = arith.constant 0 : i32
    %c0_i32_0 = arith.constant 0 : i32
    return %arg0, %c0_i32 : i32, i32
  }
}

</mosaic_0001>

<bundles_post_ra>
// kernel: tpu_custom_call.1
= control target key start
LH: loop header
LB: loop body
LE: loop exit
PB: predicated region body
PF: predicated region fallthrough
CT: control target
= control target key end

     0   :  { %8 = vsyncpa [#allocation4], 0  ;;  %s293_s0 = inlined_call_operand.hbm [shape: f32[8,256], index: 0, kind: input, shape index: {}]   ;;  %s294_s1 = inlined_call_operand.hbm [shape: f32[8,256], index: 1, kind: input, shape index: {}]   ;;  %s295_s2 = inlined_call_operand.hbm [shape: f32[8,256], index: 2, kind: input, shape index: {}]   ;;  %s296_s3 = inlined_call_operand.hbm [shape: f32[1,1], index: 3, kind: output, shape index: {}]  }
   0x1   :  { %9 = vsyncpa [#allocation7], 0 }
   0x2   :  { %10 = vsyncpa [#allocation5], 0  ;;  %s221_s12 = smov [#allocation6]   ;;  %s222_s14 = smov [#allocation3]  }
   0x3   :  { %s35_s13 = sshll.u32 %s221_s12, 4  ;;  %s21_s15 = sshll.u32 %s222_s14, 4  ;;  %s36_s13 = int_to_ptr.vmem [resolvable:$true] %s35_s13  ;;  %s22_s15 = int_to_ptr.vmem [resolvable:$true] %s21_s15 }
   0x4   :  { %s139_s18 = scalar_lea.hbm %s294_s1, 256 }
   0x5   :  { %p140_p0 = scmp.ne.s32.totalorder %s294_s1, %s139_s18  ;;  %p143_p1 = scmp.lt.u32.totalorder %s139_s18, %s294_s1 }
   0x7   :  { %p145_p2 = pnand %p143_p1, %p140_p0 }
   0x9   :  { %148 = shalt.err (!%p145_p2)
}
   0xa   :  { %s149_s23 = scalar_lea.vmem %s36_s13, 256  ;;  %p154_p4 = scmp.lt.s32.totalorder %s36_s13, %s36_s13 }
   0xb   :  { %p150_p3 = scmp.ne.s32.totalorder %s36_s13, %s149_s23  ;;  %p155_p5 = scmp.lt.s32.totalorder %s149_s23, %s149_s23 }
   0xd   :  { %p156_p6 = por %p155_p5, %p154_p4 }
   0xf   :  { %p157_p7 = pnand %p156_p6, %p150_p3 }
  0x11   :  { %160 = shalt.err (!%p157_p7)
}
  0x12   :  { %38 = dma.hbm_to_vmem [thread:$0]  %s294_s1, 256, %s36_s13, [#allocation7]  }
  0x13   :  { %s161_s28 = scalar_lea.hbm %s293_s0, 256 }
  0x14   :  { %p162_p8 = scmp.ne.s32.totalorder %s293_s0, %s161_s28  ;;  %p165_p9 = scmp.lt.u32.totalorder %s161_s28, %s293_s0 }
  0x16   :  { %p167_p10 = pnand %p165_p9, %p162_p8 }
  0x18   :  { %170 = shalt.err (!%p167_p10)
}
  0x19   :  { %s171_s6 = scalar_lea.vmem %s22_s15, 256  ;;  %p176_p12 = scmp.lt.s32.totalorder %s22_s15, %s22_s15 }
  0x1a   :  { %p172_p11 = scmp.ne.s32.totalorder %s22_s15, %s171_s6  ;;  %p177_p13 = scmp.lt.s32.totalorder %s171_s6, %s171_s6 }
  0x1c   :  { %p178_p0 = por %p177_p13, %p176_p12 }
  0x1e   :  { %p179_p1 = pnand %p178_p0, %p172_p11 }
  0x20   :  { %182 = shalt.err (!%p179_p1)
}
  0x21   :  { %24 = dma.hbm_to_vmem [thread:$0]  %s293_s0, 256, %s22_s15, [#allocation4]  }
  0x22   :  { %s223_s8 = smov [#allocation8]   ;;  %s183_s12 = scalar_lea.hbm %s295_s2, 256 }
  0x23   :  { %s49_s9 = sshll.u32 %s223_s8, 4  ;;  %p184_p2 = scmp.ne.s32.totalorder %s295_s2, %s183_s12  ;;  %s50_s9 = int_to_ptr.vmem [resolvable:$true] %s49_s9 }
  0x24   :  { %p187_p3 = scmp.lt.u32.totalorder %s183_s12, %s295_s2 }
  0x26   :  { %p189_p4 = pnand %p187_p3, %p184_p2 }
  0x28   :  { %192 = shalt.err (!%p189_p4)
}
  0x29   :  { %s193_s18 = scalar_lea.vmem %s50_s9, 256  ;;  %p198_p6 = scmp.lt.s32.totalorder %s50_s9, %s50_s9 }
  0x2a   :  { %p194_p5 = scmp.ne.s32.totalorder %s50_s9, %s193_s18  ;;  %p199_p7 = scmp.lt.s32.totalorder %s193_s18, %s193_s18 }
  0x2c   :  { %p200_p8 = por %p199_p7, %p198_p6 }
  0x2e   :  { %p201_p9 = pnand %p200_p8, %p194_p5 }
  0x30   :  { %204 = shalt.err (!%p201_p9)
}
  0x31   :  { %52 = dma.hbm_to_vmem [thread:$0]  %s295_s2, 256, %s50_s9, [#allocation7]  }
  0x32   :  { %215 = dma.done.wait [#allocation4], 256  }
  0x33   :  { %216 = vsyncadd [#allocation4], 4294967040 }
  0x34   :  { %217 = dma.done.wait [#allocation7], 512  }
  0x35   :  { %218 = vsyncadd [#allocation7], 4294966784  ;;  %v73_v0 = vld [vmem:[#allocation6] sm:$0xff]  ;;  %v74_v1 = vld [vmem:[#allocation6 + $0x8] sm:$0xff]  ;;  %s205_s21 = scalar_lea.hbm %s296_s3, 16 }
  0x36   :  { %v81_v2 = vsub.f32 0.0, %v73_v0  ;;  %v82_v3 = vsub.f32 0.0, %v74_v1  ;;  %v71_v6 = vld [vmem:[#allocation3] sm:$0xff]  ;;  %v72_v8 = vld [vmem:[#allocation3 + $0x8] sm:$0xff]  ;;  %p206_p10 = scmp.ne.s32.totalorder %s296_s3, %s205_s21  ;;  %p209_p11 = scmp.lt.u32.totalorder %s205_s21, %s296_s3 }
  0x37   :  { %v75_v7 = vld [vmem:[#allocation8] sm:$0xff]  ;;  %v76_v9 = vld [vmem:[#allocation8 + $0x8] sm:$0xff] }
  0x38   :  { %v83_v4 = vmul.f32 1.442695, %v81_v2  ;;  %v85_v5 = vmul.f32 1.442695, %v82_v3  ;;  %v77_v10 = vsub.f32 %v75_v7, %v71_v6  ;;  %v78_v11 = vsub.f32 %v76_v9, %v72_v8  ;;  %p211_p12 = pnand %p209_p11, %p206_p10 }
  0x3a   :  { %135 = vpow2.f32 %v83_v4  ;;  %v79_v12 = vmul.f32 %v77_v10, %v77_v10  ;;  %v80_v13 = vmul.f32 %v78_v11, %v78_v11 }
  0x3b   :  { %137 = vpow2.f32 %v85_v5 }
  0x44   :  { %v136_v14 = vpop.eup %135 }
  0x45   :  { %v138_v15 = vpop.eup %137  ;;  %v87_v16 = vmul.f32 %v136_v14, %v79_v12 }
  0x46   :  { %v88_v17 = vmul.f32 %v138_v15, %v80_v13 }
  0x47   :  { %v89_v18 = vadd.f32 %v87_v16, %v73_v0 }
  0x48   :  { %v90_v19 = vadd.f32 %v88_v17, %v74_v1 }
  0x4a   :  { %v102_v20 = vadd.f32 %v90_v19, %v89_v18 }
  0x4c   :  { %103 = vadd.xlane.f32.xlu0 %v102_v20 }
  0xd9   :  { %v104_v21 = vpop.xlane.xlu0 %103 }
  0xda   :  { %v105_v22 = vrot.slane %v104_v21, 4 }
  0xdc   :  { %v106_v23 = vadd.f32 %v105_v22, %v104_v21 }
  0xde   :  { %v107_v24 = vrot.slane %v106_v23, 2 }
  0xe0   :  { %v108_v25 = vadd.f32 %v107_v24, %v106_v23 }
  0xe2   :  { %v109_v26 = vrot.slane %v108_v25, 1 }
  0xe4   :  { %v110_v27 = vadd.f32 %v109_v26, %v108_v25 }
  0xe6   :  { %129 = vpush %v110_v27 }
 0x117   :  { %s130_s2 = spop %129 }
 0x118   :  { %113 = sst [smem:[#allocation9]] %s130_s2 }
 0x119   :  { %214 = shalt.err (!%p211_p12)
}
 0x11a   :  { %s224_s26 = smov [#allocation9]  }
 0x11b   :  { %121 = dma.smem_to_hbm %s224_s26, 16, %s296_s3, [#allocation5]  }
 0x11c   :  { %219 = dma.done.wait [#allocation5], 16  }
 0x11d   :  { %220 = vsyncadd [#allocation5], 4294967280 }
 0x11e   :  { %125 = sfence }
 0x11f   :  { %126 = vsyncpa [#allocation4], 1 }
 0x120   :  { %127 = vsyncpa [#allocation7], 1 }
 0x121   :  { %128 = vsyncpa [#allocation5], 1 }

</bundles_post_ra>
